<compile_context>
chip_gen: v7x
topology: tpu7x:2x2x1
jax: 0.10.0
libtpu: 0.0.40
codegen_flags: <defaults>
</compile_context>

<pallas_src>
import functools

import jax
import jax.numpy as jnp
from jax.experimental import pallas as pl
from jax.experimental.pallas import tpu as pltpu


# ---------------------------------------------------------------------------
# Batched HAN surrogate kernel (grid over graphs) fused with the LSTM layer-0
# input projection x @ Wih0 + b0 (per gate).
# ---------------------------------------------------------------------------
def _han_xw_kernel(n_main, x_ref, adj_ref, w1_ref, b1_ref, w2_ref, b2_ref,
                   wih0_ref, bih0_ref, xw_ref, oth_ref):
    # 2-layer dense graph conv surrogate: z = relu(A @ relu(X@W1+b1)) @ W2 + b2
    h = jnp.dot(x_ref[...].astype(jnp.bfloat16), w1_ref[...],
                preferred_element_type=jnp.float32) + b1_ref[...]
    h = jnp.maximum(h, 0.0)
    agg = jnp.dot(adj_ref[...].astype(jnp.bfloat16), h.astype(jnp.bfloat16),
                  preferred_element_type=jnp.float32)
    agg = jnp.maximum(agg, 0.0)
    z = jnp.dot(agg.astype(jnp.bfloat16), w2_ref[...],
                preferred_element_type=jnp.float32) + b2_ref[...]

    # others_embedding rows written directly from the kernel
    oth_ref[...] = z[n_main:].astype(oth_ref.dtype)

    # fused LSTM layer-0 input projection, one lane-dense (N_main, H) dot per gate
    z_main = z[:n_main].astype(jnp.bfloat16)
    for g in range(4):
        xw_ref[g] = (jnp.dot(z_main, wih0_ref[g],
                             preferred_element_type=jnp.float32)
                     + bih0_ref[g]).astype(xw_ref.dtype)


def han_forward_batched(xs, adjs, w1, b1, w2, b2, wih0, bih0, n_main):
    num_graphs, n_total, in_ch = xs.shape
    n_other = n_total - n_main
    hid_ch = w1.shape[2]
    out_ch = w2.shape[2]
    hidden_size = wih0.shape[2]

    kernel = functools.partial(_han_xw_kernel, n_main)
    xw, others = pl.pallas_call(
        kernel,
        out_shape=(
            jax.ShapeDtypeStruct((num_graphs, 4, n_main, hidden_size), jnp.float32),
            jax.ShapeDtypeStruct((num_graphs, n_other, out_ch), jnp.float32),
        ),
        grid_spec=pltpu.PrefetchScalarGridSpec(
            num_scalar_prefetch=0,
            grid=(num_graphs,),
            in_specs=[
                pl.BlockSpec((None, n_total, in_ch), lambda t: (t, 0, 0)),
                pl.BlockSpec((None, n_total, n_total), lambda t: (t, 0, 0)),
                pl.BlockSpec((None, in_ch, hid_ch), lambda t: (t, 0, 0)),
                pl.BlockSpec((None, 1, hid_ch), lambda t: (t, 0, 0)),
                pl.BlockSpec((None, hid_ch, out_ch), lambda t: (t, 0, 0)),
                pl.BlockSpec((None, 1, out_ch), lambda t: (t, 0, 0)),
                pl.BlockSpec((4, out_ch, hidden_size), lambda t: (0, 0, 0)),
                pl.BlockSpec((4, 1, hidden_size), lambda t: (0, 0, 0)),
            ],
            out_specs=[
                pl.BlockSpec((None, 4, n_main, hidden_size), lambda t: (t, 0, 0, 0)),
                pl.BlockSpec((None, n_other, out_ch), lambda t: (t, 0, 0)),
            ],
        ),
        compiler_params=pltpu.CompilerParams(dimension_semantics=("parallel",)),
    )(xs, adjs, w1, b1, w2, b2, wih0, bih0)
    return xw, others


# ---------------------------------------------------------------------------
# Fused multi-layer LSTM + output FC kernel.
#   grid = (N_shards ["parallel"], T ["arbitrary"])
#   h/c state per layer kept in VMEM scratch; per-row recurrence is independent
#   so sharding N across cores is safe. Layer-0 x@Wih arrives precomputed (xw).
# ---------------------------------------------------------------------------
def _make_lstm_fc_kernel(num_layers):
    def kernel(*args):
        xw_ref = args[0]
        whh0_ref = args[1]
        idx = 2
        deep = []
        for _ in range(num_layers - 1):
            deep.append((args[idx], args[idx + 1], args[idx + 2]))
            idx += 3
        wfc_ref = args[idx]
        bfc_ref = args[idx + 1]
        y_ref = args[idx + 2]
        h_sc = args[idx + 3]
        c_sc = args[idx + 4]

        t = pl.program_id(1)

        @pl.when(t == 0)
        def _init():
            h_sc[...] = jnp.zeros_like(h_sc)
            c_sc[...] = jnp.zeros_like(c_sc)

        def cell(layer, pre):
            # PyTorch gate order [i, f, g, o]; gate math in f32
            i_g = jax.nn.sigmoid(pre[0])
            f_g = jax.nn.sigmoid(pre[1])
            g_g = jnp.tanh(pre[2])
            o_g = jax.nn.sigmoid(pre[3])
            c_new = f_g * c_sc[layer] + i_g * g_g
            h_new = o_g * jnp.tanh(c_new)
            c_sc[layer] = c_new
            h_sc[layer] = h_new
            return h_new

        # layer 0: x @ Wih0 + b0 was hoisted out of the recurrence (xw_ref)
        h_prev = h_sc[0].astype(jnp.bfloat16)
        pre = [
            xw_ref[g] + jnp.dot(h_prev, whh0_ref[g],
                                preferred_element_type=jnp.float32)
            for g in range(4)
        ]
        h_out = cell(0, pre)

        # deeper layers
        for layer in range(1, num_layers):
            wih_ref, whh_ref, b_ref = deep[layer - 1]
            x_in = h_out.astype(jnp.bfloat16)
            h_prev = h_sc[layer].astype(jnp.bfloat16)
            pre = [
                jnp.dot(x_in, wih_ref[g], preferred_element_type=jnp.float32)
                + jnp.dot(h_prev, whh_ref[g], preferred_element_type=jnp.float32)
                + b_ref[g]
                for g in range(4)
            ]
            h_out = cell(layer, pre)

        # fused final FC projection (no HBM round-trip of the hidden sequence)
        y_ref[...] = (jnp.dot(h_out.astype(jnp.bfloat16), wfc_ref[...],
                              preferred_element_type=jnp.float32)
                      + bfc_ref[...]).astype(y_ref.dtype)

    return kernel


def lstm_fc_forward(xw, whh0, deep_params, w_fc, b_fc, *, n_block=None):
    T, _, N, H = xw.shape
    O = w_fc.shape[1]
    num_layers = 1 + len(deep_params)

    if (n_block is None or n_block > N or N % n_block != 0
            or (n_block != N and n_block % 8 != 0)):
        n_block = N
    n_shards = N // n_block

    in_specs = [
        pl.BlockSpec((None, 4, n_block, H), lambda n, t: (t, 0, n, 0)),
        pl.BlockSpec((4, H, H), lambda n, t: (0, 0, 0)),
    ]
    args = [xw, whh0]
    for (wih_l, whh_l, b_l) in deep_params:
        in_specs += [
            pl.BlockSpec((4, H, H), lambda n, t: (0, 0, 0)),
            pl.BlockSpec((4, H, H), lambda n, t: (0, 0, 0)),
            pl.BlockSpec((4, 1, H), lambda n, t: (0, 0, 0)),
        ]
        args += [wih_l, whh_l, b_l]
    in_specs += [
        pl.BlockSpec((H, O), lambda n, t: (0, 0)),
        pl.BlockSpec((1, O), lambda n, t: (0, 0)),
    ]
    args += [w_fc, b_fc]

    return pl.pallas_call(
        _make_lstm_fc_kernel(num_layers),
        out_shape=jax.ShapeDtypeStruct((T, N, O), jnp.float32),
        grid_spec=pltpu.PrefetchScalarGridSpec(
            num_scalar_prefetch=0,
            grid=(n_shards, T),
            in_specs=in_specs,
            out_specs=pl.BlockSpec((None, n_block, O), lambda n, t: (t, n, 0)),
            scratch_shapes=[
                pltpu.VMEM((num_layers, n_block, H), jnp.float32),
                pltpu.VMEM((num_layers, n_block, H), jnp.float32),
            ],
        ),
        compiler_params=pltpu.CompilerParams(
            dimension_semantics=("parallel", "arbitrary")),
    )(*args)


# ---------------------------------------------------------------------------
# HANLSTM wrapper
# ---------------------------------------------------------------------------
class HANLSTMPallas:
    def __init__(self, in_channels, out_channels, hidden_channels, input_size,
                 hidden_size, num_layers, output_size, num_graphs, orther_count,
                 key, lstm_n_block=8):
        assert input_size == out_channels, "LSTM input_size must match HAN out_channels"
        self.num_graphs = num_graphs
        self.orther_count = orther_count
        self.num_layers = num_layers
        self.hidden_size = hidden_size
        self.lstm_n_block = lstm_n_block

        keys = jax.random.split(key, 8 + 3 * num_layers)
        k = iter(keys)
        bf16 = jnp.bfloat16

        # HAN params stacked along the graph axis (independent per graph,
        # like nn.ModuleList). Weights stored bf16 (MXU operands), biases f32.
        self.w1 = (0.1 * jax.random.normal(
            next(k), (num_graphs, in_channels, hidden_channels), jnp.float32)).astype(bf16)
        self.b1 = jnp.zeros((num_graphs, 1, hidden_channels), jnp.float32)
        self.w2 = (0.1 * jax.random.normal(
            next(k), (num_graphs, hidden_channels, out_channels), jnp.float32)).astype(bf16)
        self.b2 = jnp.zeros((num_graphs, 1, out_channels), jnp.float32)

        # LSTM layer 0 (gate-stacked: gate axis separate from the lane axis)
        self.wih0 = (0.1 * jax.random.normal(
            next(k), (4, input_size, hidden_size), jnp.float32)).astype(bf16)
        self.bih0 = 0.01 * jax.random.normal(
            next(k), (4, 1, hidden_size), jnp.float32)       # combined b_ih + b_hh
        self.whh0 = (0.1 * jax.random.normal(
            next(k), (4, hidden_size, hidden_size), jnp.float32)).astype(bf16)

        # deeper LSTM layers
        self.deep_params = []
        for _ in range(1, num_layers):
            wih = (0.1 * jax.random.normal(
                next(k), (4, hidden_size, hidden_size), jnp.float32)).astype(bf16)
            whh = (0.1 * jax.random.normal(
                next(k), (4, hidden_size, hidden_size), jnp.float32)).astype(bf16)
            b = 0.01 * jax.random.normal(next(k), (4, 1, hidden_size), jnp.float32)
            self.deep_params.append((wih, whh, b))

        # output projection (fused into the LSTM kernel epilogue)
        self.w_fc = (0.1 * jax.random.normal(
            next(k), (hidden_size, output_size), jnp.float32)).astype(bf16)
        self.b_fc = jnp.zeros((1, output_size), jnp.float32)

    def __call__(self, xs, adjs, n_main):
        # xs: (T, N_total, in_channels), adjs: (T, N_total, N_total)
        xw, others = han_forward_batched(
            xs, adjs, self.w1, self.b1, self.w2, self.b2,
            self.wih0, self.bih0, n_main)
        lstm_output = lstm_fc_forward(
            xw, self.whh0, self.deep_params, self.w_fc, self.b_fc,
            n_block=self.lstm_n_block)                        # (T, N_main, output_size)
        others_embedding = [others[i] for i in range(others.shape[0])]
        return lstm_output, others_embedding


if __name__ == "__main__":
    key = jax.random.PRNGKey(0)

    # small, lane-friendly, module-consistent shapes
    T = 3                  # len(dataset) == number of graphs / timesteps
    N_MAIN = 16            # main nodes per graph
    ORTHER = 8             # orther_count per graph
    N_TOTAL = N_MAIN + ORTHER
    IN_CH = 8
    HID_CH = 128
    OUT_CH = 128           # == LSTM input_size
    HIDDEN = 128
    NUM_LAYERS = 2
    OUTPUT_SIZE = 128

    k_model, k_data = jax.random.split(key)
    model = HANLSTMPallas(IN_CH, OUT_CH, HID_CH, OUT_CH, HIDDEN, NUM_LAYERS,
                          OUTPUT_SIZE, T, ORTHER, k_model, lstm_n_block=8)

    # deterministic synthetic graphs: node features + row-normalized adjacency
    dks = jax.random.split(k_data, 2 * T)
    xs, adjs = [], []
    for i in range(T):
        x = jax.random.normal(dks[2 * i], (N_TOTAL, IN_CH), jnp.float32)
        a = (jax.random.uniform(dks[2 * i + 1], (N_TOTAL, N_TOTAL)) > 0.5).astype(jnp.float32)
        a = a + jnp.eye(N_TOTAL, dtype=jnp.float32)            # self loops
        a = a / jnp.sum(a, axis=1, keepdims=True)              # row-normalize
        xs.append(x)
        adjs.append(a)
    xs = jnp.stack(xs, axis=0)       # (T, N_total, IN_CH)
    adjs = jnp.stack(adjs, axis=0)   # (T, N_total, N_total)

    lstm_output, others_embedding = model(xs, adjs, N_MAIN)
    jax.block_until_ready(lstm_output)
    for o in others_embedding:
        jax.block_until_ready(o)

    assert lstm_output.shape == (T, N_MAIN, OUTPUT_SIZE)
    assert all(o.shape == (ORTHER, OUT_CH) for o in others_embedding)
    print("KERNEL_OK")
</pallas_src>

<mosaic_0001>
module attributes {stable_mosaic.version = 11 : i64} {
  func.func @_han_xw_kernel(%arg0: i32, %arg1: memref<1x24x8xf32, #tpu.memory_space<vmem>>, %arg2: memref<1x24x24xf32, #tpu.memory_space<vmem>>, %arg3: memref<1x8x128xbf16, #tpu.memory_space<vmem>>, %arg4: memref<1x1x128xf32, #tpu.memory_space<vmem>>, %arg5: memref<1x128x128xbf16, #tpu.memory_space<vmem>>, %arg6: memref<1x1x128xf32, #tpu.memory_space<vmem>>, %arg7: memref<4x128x128xbf16, #tpu.memory_space<vmem>>, %arg8: memref<4x1x128xf32, #tpu.memory_space<vmem>>, %arg9: memref<1x4x16x128xf32, #tpu.memory_space<vmem>>, %arg10: memref<1x8x128xf32, #tpu.memory_space<vmem>>) attributes {dimension_semantics = [#tpu.dimension_semantics<parallel>], iteration_bounds = array<i64: 3>, scalar_prefetch = 0 : i64, scratch_operands = 0 : i64, tpu.core_type = #tpu.core_type<tc>, window_params = [{transform_indices = @transform_0, window_bounds = array<i64: 1, 24, 8>}, {transform_indices = @transform_1, window_bounds = array<i64: 1, 24, 24>}, {transform_indices = @transform_2, window_bounds = array<i64: 1, 8, 128>}, {transform_indices = @transform_3, window_bounds = array<i64: 1, 1, 128>}, {transform_indices = @transform_4, window_bounds = array<i64: 1, 128, 128>}, {transform_indices = @transform_5, window_bounds = array<i64: 1, 1, 128>}, {pipeline_mode = #tpu.pipeline_mode<synchronous>, transform_indices = @transform_6, window_bounds = array<i64: 4, 128, 128>}, {pipeline_mode = #tpu.pipeline_mode<synchronous>, transform_indices = @transform_7, window_bounds = array<i64: 4, 1, 128>}, {transform_indices = @transform_8, window_bounds = array<i64: 1, 4, 16, 128>}, {transform_indices = @transform_9, window_bounds = array<i64: 1, 8, 128>}]} {
    %c0 = arith.constant 0 : index
    %c0_0 = arith.constant 0 : index
    %c0_1 = arith.constant 0 : index
    %0 = vector.load %arg1[%c0, %c0_0, %c0_1] : memref<1x24x8xf32, #tpu.memory_space<vmem>>, vector<1x24x8xf32>
    %1 = vector.shape_cast %0 : vector<1x24x8xf32> to vector<24x8xf32>
    %2 = arith.truncf %1 : vector<24x8xf32> to vector<24x8xbf16>
    %c0_2 = arith.constant 0 : index
    %c0_3 = arith.constant 0 : index
    %c0_4 = arith.constant 0 : index
    %3 = vector.load %arg3[%c0_2, %c0_3, %c0_4] : memref<1x8x128xbf16, #tpu.memory_space<vmem>>, vector<1x8x128xbf16>
    %4 = vector.shape_cast %3 : vector<1x8x128xbf16> to vector<8x128xbf16>
    %cst = arith.constant dense<0.000000e+00> : vector<24x128xf32>
    %5 = tpu.matmul %2, %4, %cst {dimension_numbers = #tpu.dot_dimension_numbers<[1], [0], [0], [1], [0, 0, 1, 1], [], []>} : vector<24x8xbf16>, vector<8x128xbf16>, vector<24x128xf32> -> vector<24x128xf32>
    %c0_5 = arith.constant 0 : index
    %c0_6 = arith.constant 0 : index
    %c0_7 = arith.constant 0 : index
    %6 = vector.load %arg4[%c0_5, %c0_6, %c0_7] : memref<1x1x128xf32, #tpu.memory_space<vmem>>, vector<1x1x128xf32>
    %7 = vector.shape_cast %6 : vector<1x1x128xf32> to vector<1x128xf32>
    %8 = vector.broadcast %7 : vector<1x128xf32> to vector<24x128xf32>
    %9 = arith.addf %5, %8 : vector<24x128xf32>
    %cst_8 = arith.constant 0.000000e+00 : f32
    %10 = vector.broadcast %cst_8 : f32 to vector<24x128xf32>
    %11 = arith.maximumf %9, %10 : vector<24x128xf32>
    %c0_9 = arith.constant 0 : index
    %c0_10 = arith.constant 0 : index
    %c0_11 = arith.constant 0 : index
    %12 = vector.load %arg2[%c0_9, %c0_10, %c0_11] : memref<1x24x24xf32, #tpu.memory_space<vmem>>, vector<1x24x24xf32>
    %13 = vector.shape_cast %12 : vector<1x24x24xf32> to vector<24x24xf32>
    %14 = arith.truncf %13 : vector<24x24xf32> to vector<24x24xbf16>
    %15 = arith.truncf %11 : vector<24x128xf32> to vector<24x128xbf16>
    %cst_12 = arith.constant dense<0.000000e+00> : vector<24x128xf32>
    %16 = tpu.matmul %14, %15, %cst_12 {dimension_numbers = #tpu.dot_dimension_numbers<[1], [0], [0], [1], [0, 0, 1, 1], [], []>} : vector<24x24xbf16>, vector<24x128xbf16>, vector<24x128xf32> -> vector<24x128xf32>
    %cst_13 = arith.constant 0.000000e+00 : f32
    %17 = vector.broadcast %cst_13 : f32 to vector<24x128xf32>
    %18 = arith.maximumf %16, %17 : vector<24x128xf32>
    %19 = arith.truncf %18 : vector<24x128xf32> to vector<24x128xbf16>
    %c0_14 = arith.constant 0 : index
    %c0_15 = arith.constant 0 : index
    %c0_16 = arith.constant 0 : index
    %20 = vector.load %arg5[%c0_14, %c0_15, %c0_16] : memref<1x128x128xbf16, #tpu.memory_space<vmem>>, vector<1x128x128xbf16>
    %21 = vector.shape_cast %20 : vector<1x128x128xbf16> to vector<128x128xbf16>
    %cst_17 = arith.constant dense<0.000000e+00> : vector<24x128xf32>
    %22 = tpu.matmul %19, %21, %cst_17 {dimension_numbers = #tpu.dot_dimension_numbers<[1], [0], [0], [1], [0, 0, 1, 1], [], []>} : vector<24x128xbf16>, vector<128x128xbf16>, vector<24x128xf32> -> vector<24x128xf32>
    %c0_18 = arith.constant 0 : index
    %c0_19 = arith.constant 0 : index
    %c0_20 = arith.constant 0 : index
    %23 = vector.load %arg6[%c0_18, %c0_19, %c0_20] : memref<1x1x128xf32, #tpu.memory_space<vmem>>, vector<1x1x128xf32>
    %24 = vector.shape_cast %23 : vector<1x1x128xf32> to vector<1x128xf32>
    %25 = vector.broadcast %24 : vector<1x128xf32> to vector<24x128xf32>
    %26 = arith.addf %22, %25 : vector<24x128xf32>
    %27 = vector.extract_strided_slice %26 {offsets = [16, 0], sizes = [8, 128], strides = [1, 1]} : vector<24x128xf32> to vector<8x128xf32>
    %c0_21 = arith.constant 0 : index
    %c0_22 = arith.constant 0 : index
    %c0_23 = arith.constant 0 : index
    %28 = vector.load %arg10[%c0_21, %c0_22, %c0_23] : memref<1x8x128xf32, #tpu.memory_space<vmem>>, vector<1x8x128xf32>
    %29 = vector.shape_cast %28 : vector<1x8x128xf32> to vector<8x128xf32>
    %30 = vector.shape_cast %27 : vector<8x128xf32> to vector<1x8x128xf32>
    tpu.vector_store %arg10[%c0_21, %c0_22, %c0_23], %30 {strides = array<i32>} : memref<1x8x128xf32, #tpu.memory_space<vmem>>, vector<1x8x128xf32>,
    %31 = vector.extract_strided_slice %26 {offsets = [0, 0], sizes = [16, 128], strides = [1, 1]} : vector<24x128xf32> to vector<16x128xf32>
    %32 = arith.truncf %31 : vector<16x128xf32> to vector<16x128xbf16>
    %c0_24 = arith.constant 0 : index
    %c0_25 = arith.constant 0 : index
    %c0_26 = arith.constant 0 : index
    %33 = vector.load %arg7[%c0_24, %c0_25, %c0_26] : memref<4x128x128xbf16, #tpu.memory_space<vmem>>, vector<1x128x128xbf16>
    %34 = vector.shape_cast %33 : vector<1x128x128xbf16> to vector<128x128xbf16>
    %cst_27 = arith.constant dense<0.000000e+00> : vector<16x128xf32>
    %35 = tpu.matmul %32, %34, %cst_27 {dimension_numbers = #tpu.dot_dimension_numbers<[1], [0], [0], [1], [0, 0, 1, 1], [], []>} : vector<16x128xbf16>, vector<128x128xbf16>, vector<16x128xf32> -> vector<16x128xf32>
    %c0_28 = arith.constant 0 : index
    %c0_29 = arith.constant 0 : index
    %c0_30 = arith.constant 0 : index
    %36 = vector.load %arg8[%c0_28, %c0_29, %c0_30] : memref<4x1x128xf32, #tpu.memory_space<vmem>>, vector<1x1x128xf32>
    %37 = vector.shape_cast %36 : vector<1x1x128xf32> to vector<1x128xf32>
    %38 = vector.broadcast %37 : vector<1x128xf32> to vector<16x128xf32>
    %39 = arith.addf %35, %38 : vector<16x128xf32>
    %c0_31 = arith.constant 0 : index
    %c0_32 = arith.constant 0 : index
    %c0_33 = arith.constant 0 : index
    %c0_34 = arith.constant 0 : index
    %40 = vector.load %arg9[%c0_31, %c0_32, %c0_33, %c0_34] : memref<1x4x16x128xf32, #tpu.memory_space<vmem>>, vector<1x1x16x128xf32>
    %41 = vector.shape_cast %40 : vector<1x1x16x128xf32> to vector<16x128xf32>
    %42 = vector.shape_cast %39 : vector<16x128xf32> to vector<1x1x16x128xf32>
    tpu.vector_store %arg9[%c0_31, %c0_32, %c0_33, %c0_34], %42 {strides = array<i32>} : memref<1x4x16x128xf32, #tpu.memory_space<vmem>>, vector<1x1x16x128xf32>,
    %c1 = arith.constant 1 : index
    %c0_35 = arith.constant 0 : index
    %c0_36 = arith.constant 0 : index
    %43 = vector.load %arg7[%c1, %c0_35, %c0_36] : memref<4x128x128xbf16, #tpu.memory_space<vmem>>, vector<1x128x128xbf16>
    %44 = vector.shape_cast %43 : vector<1x128x128xbf16> to vector<128x128xbf16>
    %cst_37 = arith.constant dense<0.000000e+00> : vector<16x128xf32>
    %45 = tpu.matmul %32, %44, %cst_37 {dimension_numbers = #tpu.dot_dimension_numbers<[1], [0], [0], [1], [0, 0, 1, 1], [], []>} : vector<16x128xbf16>, vector<128x128xbf16>, vector<16x128xf32> -> vector<16x128xf32>
    %c1_38 = arith.constant 1 : index
    %c0_39 = arith.constant 0 : index
    %c0_40 = arith.constant 0 : index
    %46 = vector.load %arg8[%c1_38, %c0_39, %c0_40] : memref<4x1x128xf32, #tpu.memory_space<vmem>>, vector<1x1x128xf32>
    %47 = vector.shape_cast %46 : vector<1x1x128xf32> to vector<1x128xf32>
    %48 = vector.broadcast %47 : vector<1x128xf32> to vector<16x128xf32>
    %49 = arith.addf %45, %48 : vector<16x128xf32>
    %c0_41 = arith.constant 0 : index
    %c1_42 = arith.constant 1 : index
    %c0_43 = arith.constant 0 : index
    %c0_44 = arith.constant 0 : index
    %50 = vector.load %arg9[%c0_41, %c1_42, %c0_43, %c0_44] : memref<1x4x16x128xf32, #tpu.memory_space<vmem>>, vector<1x1x16x128xf32>
    %51 = vector.shape_cast %50 : vector<1x1x16x128xf32> to vector<16x128xf32>
    %52 = vector.shape_cast %49 : vector<16x128xf32> to vector<1x1x16x128xf32>
    tpu.vector_store %arg9[%c0_41, %c1_42, %c0_43, %c0_44], %52 {strides = array<i32>} : memref<1x4x16x128xf32, #tpu.memory_space<vmem>>, vector<1x1x16x128xf32>,
    %c2 = arith.constant 2 : index
    %c0_45 = arith.constant 0 : index
    %c0_46 = arith.constant 0 : index
    %53 = vector.load %arg7[%c2, %c0_45, %c0_46] : memref<4x128x128xbf16, #tpu.memory_space<vmem>>, vector<1x128x128xbf16>
    %54 = vector.shape_cast %53 : vector<1x128x128xbf16> to vector<128x128xbf16>
    %cst_47 = arith.constant dense<0.000000e+00> : vector<16x128xf32>
    %55 = tpu.matmul %32, %54, %cst_47 {dimension_numbers = #tpu.dot_dimension_numbers<[1], [0], [0], [1], [0, 0, 1, 1], [], []>} : vector<16x128xbf16>, vector<128x128xbf16>, vector<16x128xf32> -> vector<16x128xf32>
    %c2_48 = arith.constant 2 : index
    %c0_49 = arith.constant 0 : index
    %c0_50 = arith.constant 0 : index
    %56 = vector.load %arg8[%c2_48, %c0_49, %c0_50] : memref<4x1x128xf32, #tpu.memory_space<vmem>>, vector<1x1x128xf32>
    %57 = vector.shape_cast %56 : vector<1x1x128xf32> to vector<1x128xf32>
    %58 = vector.broadcast %57 : vector<1x128xf32> to vector<16x128xf32>
    %59 = arith.addf %55, %58 : vector<16x128xf32>
    %c0_51 = arith.constant 0 : index
    %c2_52 = arith.constant 2 : index
    %c0_53 = arith.constant 0 : index
    %c0_54 = arith.constant 0 : index
    %60 = vector.load %arg9[%c0_51, %c2_52, %c0_53, %c0_54] : memref<1x4x16x128xf32, #tpu.memory_space<vmem>>, vector<1x1x16x128xf32>
    %61 = vector.shape_cast %60 : vector<1x1x16x128xf32> to vector<16x128xf32>
    %62 = vector.shape_cast %59 : vector<16x128xf32> to vector<1x1x16x128xf32>
    tpu.vector_store %arg9[%c0_51, %c2_52, %c0_53, %c0_54], %62 {strides = array<i32>} : memref<1x4x16x128xf32, #tpu.memory_space<vmem>>, vector<1x1x16x128xf32>,
    %c3 = arith.constant 3 : index
    %c0_55 = arith.constant 0 : index
    %c0_56 = arith.constant 0 : index
    %63 = vector.load %arg7[%c3, %c0_55, %c0_56] : memref<4x128x128xbf16, #tpu.memory_space<vmem>>, vector<1x128x128xbf16>
    %64 = vector.shape_cast %63 : vector<1x128x128xbf16> to vector<128x128xbf16>
    %cst_57 = arith.constant dense<0.000000e+00> : vector<16x128xf32>
    %65 = tpu.matmul %32, %64, %cst_57 {dimension_numbers = #tpu.dot_dimension_numbers<[1], [0], [0], [1], [0, 0, 1, 1], [], []>} : vector<16x128xbf16>, vector<128x128xbf16>, vector<16x128xf32> -> vector<16x128xf32>
    %c3_58 = arith.constant 3 : index
    %c0_59 = arith.constant 0 : index
    %c0_60 = arith.constant 0 : index
    %66 = vector.load %arg8[%c3_58, %c0_59, %c0_60] : memref<4x1x128xf32, #tpu.memory_space<vmem>>, vector<1x1x128xf32>
    %67 = vector.shape_cast %66 : vector<1x1x128xf32> to vector<1x128xf32>
    %68 = vector.broadcast %67 : vector<1x128xf32> to vector<16x128xf32>
    %69 = arith.addf %65, %68 : vector<16x128xf32>
    %c0_61 = arith.constant 0 : index
    %c3_62 = arith.constant 3 : index
    %c0_63 = arith.constant 0 : index
    %c0_64 = arith.constant 0 : index
    %70 = vector.load %arg9[%c0_61, %c3_62, %c0_63, %c0_64] : memref<1x4x16x128xf32, #tpu.memory_space<vmem>>, vector<1x1x16x128xf32>
    %71 = vector.shape_cast %70 : vector<1x1x16x128xf32> to vector<16x128xf32>
    %72 = vector.shape_cast %69 : vector<16x128xf32> to vector<1x1x16x128xf32>
    tpu.vector_store %arg9[%c0_61, %c3_62, %c0_63, %c0_64], %72 {strides = array<i32>} : memref<1x4x16x128xf32, #tpu.memory_space<vmem>>, vector<1x1x16x128xf32>,
    return
  }
  func.func @transform_0(%arg0: i32) -> (i32, i32, i32) {
    %c0_i32 = arith.constant 0 : i32
    %c0_i32_0 = arith.constant 0 : i32
    %c0_i32_1 = arith.constant 0 : i32
    return %arg0, %c0_i32, %c0_i32_0 : i32, i32, i32
  }
  func.func @transform_1(%arg0: i32) -> (i32, i32, i32) {
    %c0_i32 = arith.constant 0 : i32
    %c0_i32_0 = arith.constant 0 : i32
    %c0_i32_1 = arith.constant 0 : i32
    return %arg0, %c0_i32, %c0_i32_0 : i32, i32, i32
  }
  func.func @transform_2(%arg0: i32) -> (i32, i32, i32) {
    %c0_i32 = arith.constant 0 : i32
    %c0_i32_0 = arith.constant 0 : i32
    %c0_i32_1 = arith.constant 0 : i32
    return %arg0, %c0_i32, %c0_i32_0 : i32, i32, i32
  }
  func.func @transform_3(%arg0: i32) -> (i32, i32, i32) {
    %c0_i32 = arith.constant 0 : i32
    %c0_i32_0 = arith.constant 0 : i32
    %c0_i32_1 = arith.constant 0 : i32
    return %arg0, %c0_i32, %c0_i32_0 : i32, i32, i32
  }
  func.func @transform_4(%arg0: i32) -> (i32, i32, i32) {
    %c0_i32 = arith.constant 0 : i32
    %c0_i32_0 = arith.constant 0 : i32
    %c0_i32_1 = arith.constant 0 : i32
    return %arg0, %c0_i32, %c0_i32_0 : i32, i32, i32
  }
  func.func @transform_5(%arg0: i32) -> (i32, i32, i32) {
    %c0_i32 = arith.constant 0 : i32
    %c0_i32_0 = arith.constant 0 : i32
    %c0_i32_1 = arith.constant 0 : i32
    return %arg0, %c0_i32, %c0_i32_0 : i32, i32, i32
  }
  func.func @transform_6(%arg0: i32) -> (i32, i32, i32) {
    %c0_i32 = arith.constant 0 : i32
    %c0_i32_0 = arith.constant 0 : i32
    %c0_i32_1 = arith.constant 0 : i32
    %c0_i32_2 = arith.constant 0 : i32
    return %c0_i32, %c0_i32_0, %c0_i32_1 : i32, i32, i32
  }
  func.func @transform_7(%arg0: i32) -> (i32, i32, i32) {
    %c0_i32 = arith.constant 0 : i32
    %c0_i32_0 = arith.constant 0 : i32
    %c0_i32_1 = arith.constant 0 : i32
    %c0_i32_2 = arith.constant 0 : i32
    return %c0_i32, %c0_i32_0, %c0_i32_1 : i32, i32, i32
  }
  func.func @transform_8(%arg0: i32) -> (i32, i32, i32, i32) {
    %c0_i32 = arith.constant 0 : i32
    %c0_i32_0 = arith.constant 0 : i32
    %c0_i32_1 = arith.constant 0 : i32
    %c0_i32_2 = arith.constant 0 : i32
    return %arg0, %c0_i32, %c0_i32_0, %c0_i32_1 : i32, i32, i32, i32
  }
  func.func @transform_9(%arg0: i32) -> (i32, i32, i32) {
    %c0_i32 = arith.constant 0 : i32
    %c0_i32_0 = arith.constant 0 : i32
    %c0_i32_1 = arith.constant 0 : i32
    return %arg0, %c0_i32, %c0_i32_0 : i32, i32, i32
  }
}

</mosaic_0001>

<bundles_post_ra>
// kernel: tpu_custom_call.1
= control target key start
LH: loop header
LB: loop body
LE: loop exit
PB: predicated region body
PF: predicated region fallthrough
CT: control target
= control target key end

     0   :  { %15 = vsyncpa [#allocation3], 0  ;;  %s2305_s0 = inlined_call_operand.vmem [shape: f32[3,24,8], index: 0, kind: input, shape index: {}]   ;;  %s2306_s1 = inlined_call_operand.vmem [shape: f32[3,24,24], index: 1, kind: input, shape index: {}]   ;;  %s2307_s2 = inlined_call_operand.vmem [shape: bf16[3,8,128], index: 2, kind: input, shape index: {}]   ;;  %s2308_s3 = inlined_call_operand.vmem [shape: f32[3,1,128], index: 3, kind: input, shape index: {}]   ;;  %s2309_s4 = inlined_call_operand.hbm [shape: bf16[3,128,128], index: 4, kind: input, shape index: {}]   ;;  %s2310_s5 = inlined_call_operand.vmem [shape: f32[3,1,128], index: 5, kind: input, shape index: {}]   ;;  %s2311_s6 = inlined_call_operand.hbm [shape: bf16[4,128,128], index: 6, kind: input, shape index: {}]   ;;  %s2312_s7 = inlined_call_operand.vmem [shape: f32[4,1,128], index: 7, kind: input, shape index: {}]   ;;  %s2313_s8 = inlined_call_operand.hbm [shape: f32[3,4,16,128], index: 8, kind: output, shape index: {0}]   ;;  %s2314_s9 = inlined_call_operand.hbm [shape: f32[3,8,128], index: 9, kind: output, shape index: {1}]  }
   0x1   :  { %17 = vsyncpa [#allocation3 + $0x1], 0 }
   0x2   :  { %18 = vsyncpa [#allocation6], 0 }
   0x3   :  { %19 = vsyncpa [#allocation4], 0 }
   0x4   :  { %21 = vsyncpa [#allocation4 + $0x1], 0 }
   0x5   :  { %22 = vsyncpa [#allocation9], 0 }
   0x6   :  { %24 = vsyncpa [#allocation9 + $0x1], 0  ;;  %s1978_s30 = smov 0   ;;  %s1980_s10 = smov 0  }
   0x7   :  { %s1982_s11 = smov 0   ;;  %s1984_s12 = smov 0  }
   0x8 LB: > { %s1999_s13 = sadd.s32 4294967295, %s1916_s12   ;;  %s1395_s14 = sadd.s32 4294967294, %s1916_s12   ;;  %s1916_s12 = sphi %s1984_s12, %s2338_s12   ;;  %s1912_s11 = sphi %s1982_s11, %s2341_s11   ;;  %s1908_s10 = sphi %s1980_s10, %s2340_s10   ;;  %s1904_s30 = sphi %s1978_s30, %s2339_s30  }
   0x9   : > { %p154_p0 = scmp.ne.s32.totalorder %s1908_s10, %s1904_s30  ;;  %p2315_p1 = scmp.eq.s32.totalorder %s1999_s13, 0 }
   0xa   : > { %p252_p3 = scmp.eq.s32.totalorder %s1395_s14, 2  ;;  %p1396_p5 = scmp.ge.s32.totalorder %s1916_s12, 1 }
   0xb   : > { %p2008_p4 = por %p2315_p1, %p154_p0  ;;  %p285_p7 = scmp.lt.s32.totalorder %s1916_s12, 4 }
   0xc   : > { %p2013_p6 = por %p252_p3, %p154_p0  ;;  %s1918_s18 = smov [#allocation5]  }
   0xd   : > { %s2322_s15 = scalar_select %p2008_p4, 1, 0 }
   0xe   : > { %s2323_s16 = scalar_select %p2013_p6, 1, 0 }
   0xf   : > { %p2018_p8 = pnand %p1396_p5, %p285_p7  ;;  %s297_s19 = sshll.u32 %s1918_s18, 4  ;;  %s298_s19 = int_to_ptr.vmem [resolvable:$true] %s297_s19 }
  0x10   : > { %2324 = sst [smem:[#allocation14_spill]] %s2323_s16  ;;  %s2031_s21 = sadd.s32 1, %s1916_s12  }
  0x11   : > { %s2325_s17 = scalar_select %p2018_p8, 1, 0 }
  0x12   : > { %p1658_p9 = pneg %p2018_p8  ;;  %2327 = sst [smem:[#allocation15_spill]] %s2031_s21 }
  0x13   : > { %s141_s22 = sadd.s32 1, %s1912_s11  ;;  %s138_s23 = ssub.s32 %s1916_s12, %s2031_s21 }
  0x14   : > { %p2026_p10 = pnand %p1658_p9, %p2315_p1  ;;  %s1756_s26 = scalar_lea.hbm %s2311_s6, 4096 }
  0x15   : > { %p1757_p11 = scmp.ne.s32.totalorder %s2311_s6, %s1756_s26  ;;  %p1763_p3 = scmp.lt.u32.totalorder %s1756_s26, %s2311_s6 }
  0x16   : > { %p1758_p12 = pneg %p2026_p10 }
  0x18   : > { %p1759_p13 = pnand %p1758_p12, %p1757_p11 }
  0x1a   : > { %p1760_p0 = pneg %p1759_p13 }
  0x1c   : > { %p1765_p5 = pnand %p1763_p3, %p1760_p0 }
  0x1e   : > { %1768 = shalt.err (!%p1765_p5)
}
  0x1f   : > { %s1769_s18 = scalar_lea.vmem %s298_s19, 4096  ;;  %p1777_p2 = scmp.lt.s32.totalorder %s298_s19, %s298_s19 }
  0x20   : > { %p1770_p7 = scmp.ne.s32.totalorder %s298_s19, %s1769_s18  ;;  %p1778_p6 = scmp.lt.s32.totalorder %s1769_s18, %s1769_s18 }
  0x22   : > { %p1772_p9 = pnand %p1770_p7, %p1758_p12  ;;  %p1779_p4 = por %p1778_p6, %p1777_p2 }
  0x24   : > { %p1773_p1 = pneg %p1772_p9 }
  0x26   : > { %p1780_p8 = pnand %p1779_p4, %p1773_p1 }
  0x28   : > { %1783 = shalt.err (!%p1780_p8)
}
  0x29   : > { %s2321_s24 = smov 64   ;;  %s1920_s25 = smov 4  }
  0x2a   : > { %1661 = dma.hbm_to_vmem [thread:$0]  (!%p2026_p10), %s2311_s6, 4096, %s298_s19, [#allocation6], %s2321_s24, %s2321_s24, %s1920_s25  }
  0x2b   : > { %p139_p1 = scmp.eq.s32.totalorder %s138_s23, 0  ;;  %p148_p2 = scmp.ne.s32.totalorder %s1912_s11, %s1908_s10 }
  0x2c   : > { %p149_p4 = scmp.eq.s32.totalorder %s1916_s12, 0  ;;  %p1674_p6 = scmp.lt.s32.totalorder %s1916_s12, 3 }
  0x2d   : > { %s2060_s28 = scalar_select %p139_p1, %s1912_s11, %s141_s22  }
  0x2e   : > { %p150_p8 = por %p149_p4, %p148_p2  ;;  %p2328_p11 = scmp.eq.s32.totalorder %s1999_s13, 2 }
  0x2f   : > { %s343_s20 = sand.u32 1, %s1912_s11   ;;  %s1476_s14 = sshll.u32 %s1916_s12, 10 }
  0x30   : > { %p2064_p12 = por %p2328_p11, %p148_p2  ;;  %s1399_s18 = sshll.u32 %s343_s20, 6 }
  0x31   : > { %s2073_s26 = scalar_lea.hbm %s2309_s4, %s1476_s14  ;;  %s347_s19 = scalar_lea.vmem [#allocation2], %s1399_s18 }
  0x32   : > { %s354_s22 = sshll.u32 %s347_s19, 4  ;;  %p2075_p10 = pnand %p1674_p6, %p150_p8  ;;  %s2079_s22 = int_to_ptr.vmem [resolvable:$true] %s354_s22 }
  0x33   : > { %s2081_s27 = scalar_lea.sflag [#allocation3], %s343_s20  ;;  %s1784_s24 = scalar_lea.hbm %s2073_s26, 1024 }
  0x34   : > { %p1785_p13 = scmp.ne.s32.totalorder %s2073_s26, %s1784_s24  ;;  %p1786_p0 = pneg %p2075_p10 }
  0x35   : > { %s1789_s14 = scalar_lea.hbm %s2309_s4, 3072  ;;  %p1790_p7 = scmp.lt.u32.totalorder %s2073_s26, %s2309_s4 }
  0x36   : > { %p1787_p3 = pnand %p1786_p0, %p1785_p13  ;;  %p1791_p9 = scmp.lt.u32.totalorder %s1789_s14, %s1784_s24 }
  0x37   : > { %p1793_p2 = scmp.lt.u32.totalorder %s1784_s24, %s2073_s26 }
  0x38   : > { %p1788_p5 = pneg %p1787_p3  ;;  %p1792_p1 = por %p1791_p9, %p1790_p7 }
  0x3a   : > { %p1794_p4 = por %p1793_p2, %p1792_p1 }
  0x3c   : > { %p1795_p6 = pnand %p1794_p4, %p1788_p5 }
  0x3e   : > { %1798 = shalt.err (!%p1795_p6)
}
  0x3f   : > { %s1799_s20 = scalar_lea.vmem %s2079_s22, 1024  ;;  %s1921_s16 = smov [#allocation2]  }
  0x40   : > { %p1800_p8 = scmp.ne.s32.totalorder %s2079_s22, %s1799_s20  ;;  %s1804_s21 = sshll.u32 %s1921_s16, 4  ;;  %s1805_s21 = int_to_ptr.vmem [resolvable:$false] %s1804_s21 }
  0x41   : > { %s1806_s18 = scalar_lea.vmem %s1805_s21, 2048  ;;  %p1807_p3 = scmp.lt.s32.totalorder %s2079_s22, %s1805_s21 }
  0x42   : > { %p1802_p11 = pnand %p1800_p8, %p1786_p0  ;;  %p1808_p7 = scmp.lt.s32.totalorder %s1806_s18, %s1799_s20 }
  0x44   : > { %p1803_p13 = pneg %p1802_p11  ;;  %p1809_p9 = por %p1808_p7, %p1807_p3 }
  0x46   : > { %p1810_p1 = pnand %p1809_p9, %p1803_p13 }
  0x48   : > { %1813 = shalt.err (!%p1810_p1)
}
  0x49   : > { %s2331_s24 = smov 64   ;;  %p2332_p0 = scmp.ne.s32.totalorder %s2325_s17, 0 }
  0x4a   : > { %1665 = dma.hbm_to_vmem [thread:$0]  (!%p2075_p10), %s2073_s26, 1024, %s2079_s22, %s2081_s27, %s2331_s24, %s2331_s24, %s1920_s25  }
  0x4b   : > { %372 = sbr.rel (%p2332_p0) target bundleno = 1028 (0x404), region = 52  ;;  %s2115_s14 = sand.u32 (!%p2332_p0), 1, %s1908_s10  }
  0x4c   : > { %s1403_s19 = sshll.u32 (!%p2332_p0), %s2115_s14, 6  ;;  %s375_s20 = scalar_lea.sflag (!%p2332_p0), [#allocation3], %s2115_s14 }
  0x4d   : > { %s2121_s23 = scalar_lea.vmem (!%p2332_p0), [#allocation2], %s1403_s19  ;;  %p2333_p5 = scmp.ne.s32.totalorder (!%p2332_p0), %s2322_s15, 0 }
  0x52   : > { %1887 = dma.done.wait (%p2333_p5), %s375_s20, 1024  }
  0x53   : > { %1889 = vsyncadd (%p2333_p5), %s375_s20, 4294966272  ;;  %p2334_p10 = scmp.eq.s32.totalorder %s1999_s13, 0 }
  0x55   : > { %1891 = dma.done.wait (%p2334_p10), [#allocation6], 4096   ;;  %p2335_p2 = pmov %p2334_p10 }
  0x56   : > { %p442_p4 = scmp.lt.s32.totalorder %s1999_s13, 2  ;;  %vm483_vm0 = vcmask 1043456   ;;  %vm476_vm1 = vcmask 64512   ;;  %vm545_vm2 = vcmask 195584   ;;  %v1716_v10 = vld [vmem:[%s2121_s23] sm:$0xff]   ;;  %v1717_v11 = vld [vmem:[%s2121_s23 + $0x8] sm:$0xff]  }
  0x57   : > { %1893 = vsyncadd (%p2335_p2), [#allocation6], 4294963200  ;;  %1545 = vmatprep.subr.bf16.mxu0 %v1716_v10  ;;  %v1718_v12 = vld [vmem:[%s2121_s23 + $0x10] sm:$0xff]   ;;  %v1719_v13 = vld [vmem:[%s2121_s23 + $0x18] sm:$0xff]   ;;  %v1922_v35 = vmov 0.0   ;;  %vm1923_vm3 = vmmov 0  }
  0x58   : > { %s2133_s17 = scalar_select %p442_p4, %s1999_s13, 2  ;;  %1546 = vmatpush3.bf16.msra.mxu0 %v1716_v10  ;;  %v1720_v14 = vld [vmem:[%s2121_s23 + $0x20] sm:$0xff]   ;;  %v1721_v15 = vld [vmem:[%s2121_s23 + $0x28] sm:$0xff]   ;;  %v1722_v32 = vld [vmem:[%s2121_s23 + $0x30] sm:$0xff]  }
  0x59   : > { %1547 = vmatprep.subr.bf16.mxu0 %v1717_v11  ;;  %v1723_v33 = vld [vmem:[%s2121_s23 + $0x38] sm:$0xff]   ;;  %v1724_v34 = vld [vmem:[#allocation5] sm:$0xff]   ;;  %v1726_v36 = vld [vmem:[#allocation5 + $0x8] sm:$0xff]   ;;  %s1406_s21 = sshll.u32 %s2115_s14, 3  ;;  %s1200_s22 = scalar_lea.sflag [#allocation9], %s2115_s14 }
  0x5a   : > { %s1409_s25 = sshll.u32 %s2133_s17, 2  ;;  %s1647_s26 = smul.u32 24, %s2133_s17  ;;  %v1728_v37 = vld [vmem:[#allocation5 + $0x10] sm:$0xff]   ;;  %v1730_v38 = vld [vmem:[#allocation5 + $0x18] sm:$0xff]   ;;  %v1732_v39 = vld [vmem:[#allocation5 + $0x20] sm:$0xff]  }
  0x5b   : > { %s455_s15 = scalar_lea.vmem %s2307_s2, %s1409_s25  ;;  %s458_s27 = scalar_lea.vmem %s2308_s3, %s2133_s17  ;;  %v1734_v40 = vld [vmem:[#allocation5 + $0x28] sm:$0xff]   ;;  %v1725_v49 = vld [vmem:[#allocation5 + $0x40] sm:$0xff]   ;;  %v1729_v52 = vld [vmem:[#allocation5 + $0x50] sm:$0xff]  }
  0x5c   : > { %s446_s18 = scalar_lea.vmem %s2305_s0, %s1647_s26  ;;  %v468_v0 = vld [vmem:[%s455_s15] sm:$0xf]  ;;  %s2148_s25 = scalar_lea.vmem %s2306_s1, %s1647_s26  ;;  %1548 = vmatpush3.bf16.msra.mxu0 %v1717_v11  ;;  %v1727_v51 = vld [vmem:[#allocation5 + $0x48] sm:$0xff]   ;;  %v1733_v54 = vld [vmem:[#allocation5 + $0x60] sm:$0xff]  }
  0x5d   : > { %v463_v1 = vld [vmem:[%s446_s18] sm:$0xff]  ;;  %v464_v2 = vld [vmem:[%s446_s18 + $0x8] sm:$0xff]  ;;  %1645 = vmatprep.subr.msk.bf16.mxu1 %vm483_vm0, %v468_v0  ;;  %v485_v3 = vsel %vm483_vm0, %v468_v0, 0  ;;  %v465_v4 = vld [vmem:[%s446_s18 + $0x10] sm:$0xff]  ;;  %1549 = vmatprep.subr.bf16.mxu0 %v1718_v12  ;;  %s461_s16 = scalar_lea.vmem %s2310_s5, %s2133_s17  ;;  %s2196_s18 = scalar_lea.vmem [#allocation8], %s1406_s21 }
  0x5e   : > { %v466_v5 = vpack.c.bf16 %v464_v2, %v463_v1  ;;  %1532 = vmatpush3.bf16.msra.mxu1 %v485_v3  ;;  %v467_v6 = vpack.c.bf16 %v465_v4, %v465_v4  ;;  %v538_v7 = vld [vmem:[%s2148_s25] sm:$0xff]  ;;  %v539_v8 = vld [vmem:[%s2148_s25 + $0x8] sm:$0xff]  ;;  %v540_v29 = vld [vmem:[%s2148_s25 + $0x10] sm:$0xff]  ;;  %s1473_s17 = sshll.u32 %s1999_s13, 7  ;;  %s1229_s26 = sshll.u32 %s2196_s18, 4  ;;  %s1230_s26 = int_to_ptr.vmem [resolvable:$true] %s1229_s26 }
  0x5f   : > { %v541_v9 = vpack.c.bf16 %v539_v8, %v538_v7  ;;  %v1410_v16 = vld [vmem:[%s458_s27] ss:$0 sm:$0xff]  ;;  %v542_v30 = vpack.c.bf16 %v540_v29, %v540_v29  ;;  %v1735_v55 = vld [vmem:[#allocation5 + $0x68] sm:$0xff]   ;;  %v1736_v56 = vld [vmem:[#allocation5 + $0x30] sm:$0xff]   ;;  %s2221_s25 = scalar_lea.hbm %s2314_s9, %s1473_s17  ;;  %s1814_s27 = scalar_lea.vmem %s1230_s26, 128 }
  0x60   : > { %1533 = vmatprep.mubr.msk.bf16.mxu1 %vm476_vm1, %v466_v5  ;;  %1550 = vmatpush3.bf16.msra.mxu0 %v1718_v12  ;;  %v1731_v53 = vld [vmem:[#allocation5 + $0x58] sm:$0xff]   ;;  %v1737_v57 = vld [vmem:[#allocation5 + $0x70] sm:$0xff]   ;;  %v1740_v4 = vld [vmem:[#allocation5 + $0x80] sm:$0xff]   ;;  %p1815_p6 = scmp.ne.s32.totalorder %s1230_s26, %s1814_s27  ;;  %s1924_s23 = smov [#allocation8]  }
  0x61   : > { %1534 = vmatmul.mubr.msk.bf16.vlgmr.msra.gmra.mrb[0].mxu1 %vm476_vm1, %v467_v6  ;;  %1551 = vmatprep.subr.bf16.mxu0 %v1719_v13  ;;  %v1738_v58 = vld [vmem:[#allocation5 + $0x38] sm:$0xff]   ;;  %v1741_v5 = vld [vmem:[#allocation5 + $0xc0] sm:$0xff]   ;;  %v1742_v7 = vld [vmem:[#allocation5 + $0x88] sm:$0xff]   ;;  %s1818_s15 = sshll.u32 %s1924_s23, 4  ;;  %s1819_s15 = int_to_ptr.vmem [resolvable:$false] %s1818_s15 }
  0x62   : > { %1541 = vmatprep.mubr.msk.bf16.mxu1 %vm545_vm2, %v541_v9  ;;  %v1739_v59 = vld [vmem:[#allocation5 + $0x78] sm:$0xff]   ;;  %v1743_v8 = vld [vmem:[#allocation5 + $0xc8] sm:$0xff]   ;;  %v1744_v9 = vld [vmem:[#allocation5 + $0x90] sm:$0xff]   ;;  %p1816_p8 = pnand %p1815_p6, %p2064_p12  ;;  %p1821_p13 = scmp.lt.s32.totalorder %s1230_s26, %s1819_s15 }
  0x63   : > { %v1415_v60 = vld [vmem:[%s461_s16] ss:$0 sm:$0xff]  ;;  %v1745_v10 = vld [vmem:[#allocation5 + $0xd0] sm:$0xff]   ;;  %s1820_s16 = scalar_lea.vmem %s1819_s15, 256 }
  0x64   : > { %1552 = vmatpush3.bf16.msra.mxu0 %v1719_v13  ;;  %v1746_v11 = vld [vmem:[#allocation5 + $0x98] sm:$0xff]   ;;  %v1748_v13 = vld [vmem:[#allocation5 + $0xa0] sm:$0xff]   ;;  %p1817_p11 = pneg %p1816_p8  ;;  %p1822_p3 = scmp.lt.s32.totalorder %s1820_s16, %s1814_s27 }
  0x65   : > { %1553 = vmatprep.subr.bf16.mxu0 %v1720_v14  ;;  %v1747_v12 = vld [vmem:[#allocation5 + $0xd8] sm:$0xff]  }
  0x66   : > { %p1823_p7 = por %p1822_p3, %p1821_p13 }
  0x68   : > { %1554 = vmatpush3.bf16.msra.mxu0 %v1720_v14  ;;  %v1749_v14 = vld [vmem:[#allocation5 + $0xe0] sm:$0xff]   ;;  %p1824_p9 = pnand %p1823_p7, %p1817_p11 }
  0x69   : > { %1555 = vmatprep.subr.bf16.mxu0 %v1721_v15 }
  0x6c   : > { %1556 = vmatpush3.bf16.msra.mxu0 %v1721_v15  ;;  %v1750_v15 = vld [vmem:[#allocation5 + $0xa8] sm:$0xff]  }
  0x6d   : > { %1557 = vmatprep.subr.bf16.mxu0 %v1722_v32 }
  0x70   : > { %1558 = vmatpush3.bf16.msra.mxu0 %v1722_v32 }
  0x71   : > { %1559 = vmatprep.subr.bf16.mxu0 %v1723_v33 }
  0x74   : > { %1560 = vmatpush3.bf16.msra.mxu0 %v1723_v33 }
  0x75   : > { %1585 = vmatprep.subr.bf16.mxu0 %v1922_v35 }
 0x134   : > { %v1535_v17 = vpop.f32.mrb[0].mxu1 }
 0x135   : > { %v521_v18 = vpop.f32.mrb[1].mxu1  ;;  %v530_v19 = vadd.f32 %v1535_v17, %v1410_v16  ;;  %v1752_v17 = vld [vmem:[#allocation5 + $0xb0] sm:$0xff]  }
 0x136   : > { %v522_v20 = vadd.f32 %v1410_v16, %v521_v18  ;;  %v1536_v21 = vpop.f32.mrb[2].mxu1  ;;  %v1753_v18 = vld [vmem:[#allocation5 + $0xf0] sm:$0xff]  }
 0x137   : > { %v524_v22 = vpop.f32.mrb[3].mxu1  ;;  %v537_v24 = vmax.f32 %v530_v19, 0.0  ;;  %v1754_v19 = vld [vmem:[#allocation5 + $0xb8] sm:$0xff]  }
 0x138   : > { %v525_v23 = vadd.f32 %v1410_v16, %v524_v22  ;;  %v535_v25 = vmax.f32 %v522_v20, 0.0  ;;  %v1751_v16 = vld [vmem:[#allocation5 + $0xe8] sm:$0xff]   ;;  %v1755_v20 = vld [vmem:[#allocation5 + $0xf8] sm:$0xff]  }
 0x139   : > { %v544_v28 = vpack.c.bf16 %v537_v24, %v537_v24 }
 0x13a   : > { %v536_v26 = vmax.f32 %v525_v23, 0.0 }
 0x13b   : > { %v553_v31 = vsel %vm483_vm0, %v544_v28, 0 }
 0x13c   : > { %v543_v27 = vpack.c.bf16 %v536_v26, %v535_v25 }
 0x13e   : > { %1537 = vmatprep.subr.bf16.mxu1 %v543_v27 }
 0x13f   : > { %1538 = vmatpush3.bf16.msra.mxu1 %v543_v27 }
 0x140   : > { %1646 = vmatprep.subr.msk.bf16.mxu1 %vm483_vm0, %v544_v28 }
 0x143   : > { %1540 = vmatpush3.bf16.msra.mxu1 %v553_v31 }
 0x144   : > { %1565 = vmatprep.subr.bf16.mxu1 %v1922_v35 }
 0x146   : > { %1542 = vmatmul.mubr.msk.bf16.vlgmr.msra.gmra.mrb[4].mxu1 %vm545_vm2, %v542_v30 }
 0x147   : > { %1566 = vmatpush3.bf16.msra.mxu1 %v1724_v34  ;;  %1581 = vmatprep.mubr.msk.bf16.mxu1 %vm1923_vm3, %v1922_v35 }
 0x148   : > { %1567 = vmatprep.subr.bf16.mxu1 %v1922_v35 }
 0x14b   : > { %1568 = vmatpush3.bf16.msra.mxu1 %v1726_v36 }
 0x14c   : > { %1569 = vmatprep.subr.bf16.mxu1 %v1922_v35 }
 0x14f   : > { %1570 = vmatpush3.bf16.msra.mxu1 %v1728_v37 }
 0x150   : > { %1571 = vmatprep.subr.bf16.mxu1 %v1922_v35 }
 0x153   : > { %1572 = vmatpush3.bf16.msra.mxu1 %v1730_v38 }
 0x154   : > { %1573 = vmatprep.subr.bf16.mxu1 %v1922_v35 }
 0x157   : > { %1574 = vmatpush3.bf16.msra.mxu1 %v1732_v39 }
 0x158   : > { %1575 = vmatprep.subr.bf16.mxu1 %v1922_v35 }
 0x15b   : > { %1576 = vmatpush3.bf16.msra.mxu1 %v1734_v40 }
 0x15c   : > { %1577 = vmatprep.subr.bf16.mxu1 %v1922_v35 }
 0x15f   : > { %1578 = vmatpush3.bf16.msra.mxu1 %v1736_v56 }
 0x160   : > { %1579 = vmatprep.subr.bf16.mxu1 %v1922_v35 }
 0x163   : > { %1580 = vmatpush3.bf16.msra.mxu1 %v1738_v58 }
 0x164   : > { %1605 = vmatprep.subr.bf16.mxu1 %v1922_v35 }
 0x219   : > { %v1543_v41 = vpop.f32.mrb[4].mxu1 }
 0x21a   : > { %v589_v42 = vpop.f32.mrb[5].mxu1  ;;  %v605_v44 = vmax.f32 %v1543_v41, 0.0 }
 0x21b   : > { %v1544_v43 = vpop.f32.mrb[6].mxu1  ;;  %v603_v46 = vmax.f32 %v589_v42, 0.0 }
 0x21c   : > { %v592_v45 = vpop.f32.mrb[7].mxu1  ;;  %v607_v50 = vpack.c.bf16 %v605_v44, %v605_v44 }
 0x21d   : > { %v604_v47 = vmax.f32 %v592_v45, 0.0 }
 0x21f   : > { %v606_v48 = vpack.c.bf16 %v604_v47, %v603_v46 }
 0x221   : > { %1561 = vmatprep.mubr.bf16.mxu0 %v606_v48 }
 0x222   : > { %1562 = vmatmul.mubr.bf16.vlgmr.msra.gmra.mrb[0].mxu0 %v607_v50 }
 0x223   : > { %1586 = vmatpush3.bf16.msra.mxu0 %v1725_v49  ;;  %1601 = vmatprep.mubr.msk.bf16.mxu0 %vm1923_vm3, %v1922_v35 }
 0x224   : > { %1587 = vmatprep.subr.bf16.mxu0 %v1922_v35 }
 0x227   : > { %1588 = vmatpush3.bf16.msra.mxu0 %v1727_v51 }
 0x228   : > { %1589 = vmatprep.subr.bf16.mxu0 %v1922_v35 }
 0x22b   : > { %1590 = vmatpush3.bf16.msra.mxu0 %v1729_v52 }
 0x22c   : > { %1591 = vmatprep.subr.bf16.mxu0 %v1922_v35 }
 0x22f   : > { %1592 = vmatpush3.bf16.msra.mxu0 %v1731_v53 }
 0x230   : > { %1593 = vmatprep.subr.bf16.mxu0 %v1922_v35 }
 0x233   : > { %1594 = vmatpush3.bf16.msra.mxu0 %v1733_v54 }
 0x234   : > { %1595 = vmatprep.subr.bf16.mxu0 %v1922_v35 }
 0x237   : > { %1596 = vmatpush3.bf16.msra.mxu0 %v1735_v55 }
 0x238   : > { %1597 = vmatprep.subr.bf16.mxu0 %v1922_v35 }
 0x23b   : > { %1598 = vmatpush3.bf16.msra.mxu0 %v1737_v57 }
 0x23c   : > { %1599 = vmatprep.subr.bf16.mxu0 %v1922_v35 }
 0x23f   : > { %1600 = vmatpush3.bf16.msra.mxu0 %v1739_v59 }
 0x240   : > { %1625 = vmatprep.subr.bf16.mxu0 %v1922_v35 }
 0x2f5   : > { %v1563_v61 = vpop.f32.mrb[0].mxu0 }
 0x2f6   : > { %v722_v62 = vadd.f32 %v1563_v61, %v1415_v60  ;;  %v713_v63 = vpop.f32.mrb[1].mxu0 }
 0x2f7   : > { %v1564_v0 = vpop.f32.mrb[2].mxu0  ;;  %v714_v2 = vadd.f32 %v1415_v60, %v713_v63 }
 0x2f8   : > { %727 = vst [vmem:[%s2196_s18] sm:$0xff] %v722_v62  ;;  %v716_v1 = vpop.f32.mrb[3].mxu0 }
 0x2f9   : > { %v717_v3 = vadd.f32 %v1415_v60, %v716_v1 }
 0x2fb   : > { %v728_v6 = vpack.c.bf16 %v717_v3, %v714_v2 }
 0x2fd   : > { %1582 = vmatmul.mubr.bf16.vlgmr.msra.gmra.mrb[8].mxu1 %v728_v6  ;;  %1602 = vmatmul.mubr.bf16.vlgmr.msra.gmra.mrb[4].mxu0 %v728_v6 }
 0x2fe   : > { %1606 = vmatpush3.bf16.msra.mxu1 %v1740_v4  ;;  %1626 = vmatpush3.bf16.msra.mxu0 %v1741_v5 }
 0x2ff   : > { %1607 = vmatprep.subr.bf16.mxu1 %v1922_v35  ;;  %1627 = vmatprep.subr.bf16.mxu0 %v1922_v35 }
 0x300   : > { %1621 = vmatprep.mubr.msk.bf16.mxu1 %vm1923_vm3, %v1922_v35  ;;  %1641 = vmatprep.mubr.msk.bf16.mxu0 %vm1923_vm3, %v1922_v35 }
 0x302   : > { %1608 = vmatpush3.bf16.msra.mxu1 %v1742_v7  ;;  %1628 = vmatpush3.bf16.msra.mxu0 %v1743_v8 }
 0x303   : > { %1609 = vmatprep.subr.bf16.mxu1 %v1922_v35  ;;  %1629 = vmatprep.subr.bf16.mxu0 %v1922_v35 }
 0x306   : > { %1610 = vmatpush3.bf16.msra.mxu1 %v1744_v9  ;;  %1630 = vmatpush3.bf16.msra.mxu0 %v1745_v10 }
 0x307   : > { %1611 = vmatprep.subr.bf16.mxu1 %v1922_v35  ;;  %1631 = vmatprep.subr.bf16.mxu0 %v1922_v35 }
 0x30a   : > { %1612 = vmatpush3.bf16.msra.mxu1 %v1746_v11  ;;  %1632 = vmatpush3.bf16.msra.mxu0 %v1747_v12 }
 0x30b   : > { %1613 = vmatprep.subr.bf16.mxu1 %v1922_v35  ;;  %1633 = vmatprep.subr.bf16.mxu0 %v1922_v35 }
 0x30e   : > { %1614 = vmatpush3.bf16.msra.mxu1 %v1748_v13  ;;  %1634 = vmatpush3.bf16.msra.mxu0 %v1749_v14 }
 0x30f   : > { %1615 = vmatprep.subr.bf16.mxu1 %v1922_v35  ;;  %1635 = vmatprep.subr.bf16.mxu0 %v1922_v35 }
 0x312   : > { %1616 = vmatpush3.bf16.msra.mxu1 %v1750_v15  ;;  %1636 = vmatpush3.bf16.msra.mxu0 %v1751_v16 }
 0x313   : > { %1617 = vmatprep.subr.bf16.mxu1 %v1922_v35  ;;  %1637 = vmatprep.subr.bf16.mxu0 %v1922_v35 }
 0x316   : > { %1618 = vmatpush3.bf16.msra.mxu1 %v1752_v17  ;;  %1638 = vmatpush3.bf16.msra.mxu0 %v1753_v18 }
 0x317   : > { %1619 = vmatprep.subr.bf16.mxu1 %v1922_v35  ;;  %1639 = vmatprep.subr.bf16.mxu0 %v1922_v35 }
 0x31a   : > { %1620 = vmatpush3.bf16.msra.mxu1 %v1754_v19  ;;  %1640 = vmatpush3.bf16.msra.mxu0 %v1755_v20 }
 0x31d   : > { %1622 = vmatmul.mubr.bf16.vlgmr.msra.gmra.mrb[12].mxu1 %v728_v6  ;;  %1642 = vmatmul.mubr.bf16.vlgmr.msra.gmra.mrb[8].mxu0 %v728_v6 }
 0x31e   : > { %1827 = shalt.err (!%p1824_p9)
}
 0x31f   : > { %s1828_s21 = scalar_lea.hbm %s2221_s25, 128  ;;  %s1832_s24 = scalar_lea.hbm %s2314_s9, 384 }
 0x320   : > { %p1829_p1 = scmp.ne.s32.totalorder %s2221_s25, %s1828_s21  ;;  %p1833_p10 = scmp.lt.u32.totalorder %s2221_s25, %s2314_s9 }
 0x321   : > { %p1834_p2 = scmp.lt.u32.totalorder %s1832_s24, %s1828_s21  ;;  %p1836_p6 = scmp.lt.u32.totalorder %s1828_s21, %s2221_s25 }
 0x322   : > { %p1830_p0 = pnand %p1829_p1, %p2064_p12 }
 0x323   : > { %p1835_p4 = por %p1834_p2, %p1833_p10 }
 0x324   : > { %p1831_p5 = pneg %p1830_p0 }
 0x325   : > { %p1837_p8 = por %p1836_p6, %p1835_p4 }
 0x327   : > { %p1838_p11 = pnand %p1837_p8, %p1831_p5 }
 0x329   : > { %1841 = shalt.err (!%p1838_p11)
}
 0x32a   : > { %1655 = dma.vmem_to_hbm [thread:$0]  (%p2064_p12), %s1230_s26, 128, %s2221_s25, %s1200_s22   ;;  %v1424_v21 = vld [vmem:[%s2312_s7] ss:$0 sm:$0xff]  ;;  %v1434_v22 = vld [vmem:[%s2312_s7 + $0x1] ss:$0 sm:$0xff] }
 0x32b   : > { %s434_s21 = scalar_lea.vmem [#allocation7], %s1403_s19  ;;  %v1446_v35 = vld [vmem:[%s2312_s7 + $0x2] ss:$0 sm:$0xff]  ;;  %v1458_v36 = vld [vmem:[%s2312_s7 + $0x3] ss:$0 sm:$0xff]  ;;  %s1477_s20 = sshll.u32 %s1999_s13, 10 }
 0x32c   : > { %s1213_s25 = sshll.u32 %s434_s21, 4  ;;  %s2262_s27 = scalar_lea.hbm %s2313_s8, %s1477_s20  ;;  %s2257_s25 = int_to_ptr.vmem [resolvable:$true] %s1213_s25 }
 0x32d   : > { %s1195_s13 = scalar_lea.sflag [#allocation4], %s2115_s14  ;;  %s1842_s15 = scalar_lea.vmem %s2257_s25, 1024 }
 0x32e   : > { %p1843_p13 = scmp.ne.s32.totalorder %s2257_s25, %s1842_s15  ;;  %s1925_s16 = smov [#allocation7]  }
 0x32f   : > { %s1846_s18 = sshll.u32 %s1925_s16, 4  ;;  %s1847_s18 = int_to_ptr.vmem [resolvable:$false] %s1846_s18 }
 0x330   : > { %p1844_p3 = pnand %p1843_p13, %p2064_p12  ;;  %s1848_s26 = scalar_lea.vmem %s1847_s18, 2048 }
 0x331   : > { %p1849_p9 = scmp.lt.s32.totalorder %s2257_s25, %s1847_s18  ;;  %p1850_p1 = scmp.lt.s32.totalorder %s1848_s26, %s1842_s15 }
 0x332   : > { %p1845_p7 = pneg %p1844_p3 }
 0x333   : > { %p1851_p0 = por %p1850_p1, %p1849_p9 }
 0x335   : > { %p1852_p5 = pnand %p1851_p0, %p1845_p7 }
 0x3d0   : > { %v834_v23 = vpop.f32.mrb[8].mxu1  ;;  %v950_v24 = vpop.f32.mrb[4].mxu0 }
 0x3d1   : > { %v835_v25 = vadd.f32 %v1424_v21, %v834_v23  ;;  %v951_v26 = vadd.f32 %v1434_v22, %v950_v24  ;;  %v1583_v27 = vpop.f32.mrb[9].mxu1  ;;  %v1603_v28 = vpop.f32.mrb[5].mxu0 }
 0x3d2   : > { %v837_v29 = vpop.f32.mrb[10].mxu1  ;;  %v953_v30 = vpop.f32.mrb[6].mxu0 }
 0x3d3   : > { %841 = vst [vmem:[%s434_s21] sm:$0xff] %v835_v25  ;;  %1443 = vst [vmem:[%s434_s21 + $0x10] sm:$0xff] %v951_v26  ;;  %v838_v31 = vadd.f32 %v1424_v21, %v837_v29  ;;  %v954_v32 = vadd.f32 %v1434_v22, %v953_v30  ;;  %v1584_v33 = vpop.f32.mrb[11].mxu1  ;;  %v1604_v34 = vpop.f32.mrb[7].mxu0 }
 0x3d5   : > { %842 = vst [vmem:[%s434_s21 + $0x8] sm:$0xff] %v838_v31  ;;  %1444 = vst [vmem:[%s434_s21 + $0x18] sm:$0xff] %v954_v32 }
 0x3f0   : > { %v1067_v37 = vpop.f32.mrb[12].mxu1  ;;  %v1184_v38 = vpop.f32.mrb[8].mxu0 }
 0x3f1   : > { %v1068_v39 = vadd.f32 %v1446_v35, %v1067_v37  ;;  %v1185_v40 = vadd.f32 %v1458_v36, %v1184_v38  ;;  %v1623_v41 = vpop.f32.mrb[13].mxu1  ;;  %v1643_v42 = vpop.f32.mrb[9].mxu0 }
 0x3f2   : > { %v1070_v43 = vpop.f32.mrb[14].mxu1  ;;  %v1187_v44 = vpop.f32.mrb[10].mxu0 }
 0x3f3   : > { %1455 = vst [vmem:[%s434_s21 + $0x20] sm:$0xff] %v1068_v39  ;;  %1467 = vst [vmem:[%s434_s21 + $0x30] sm:$0xff] %v1185_v40  ;;  %v1071_v45 = vadd.f32 %v1446_v35, %v1070_v43  ;;  %v1188_v46 = vadd.f32 %v1458_v36, %v1187_v44  ;;  %v1624_v47 = vpop.f32.mrb[15].mxu1  ;;  %v1644_v48 = vpop.f32.mrb[11].mxu0 }
 0x3f5   : > { %1456 = vst [vmem:[%s434_s21 + $0x28] sm:$0xff] %v1071_v45  ;;  %1468 = vst [vmem:[%s434_s21 + $0x38] sm:$0xff] %v1188_v46 }
 0x3f6   : > { %1855 = shalt.err (!%p1852_p5)
}
 0x3f7   : > { %s1856_s21 = scalar_lea.hbm %s2262_s27, 1024  ;;  %s1860_s24 = scalar_lea.hbm %s2313_s8, 3072 }
 0x3f8   : > { %p1857_p10 = scmp.ne.s32.totalorder %s2262_s27, %s1856_s21  ;;  %p1861_p6 = scmp.lt.u32.totalorder %s2262_s27, %s2313_s8 }
 0x3f9   : > { %p1862_p8 = scmp.lt.u32.totalorder %s1860_s24, %s1856_s21  ;;  %p1864_p13 = scmp.lt.u32.totalorder %s1856_s21, %s2262_s27 }
 0x3fa   : > { %p1858_p2 = pnand %p1857_p10, %p2064_p12 }
 0x3fb   : > { %p1863_p11 = por %p1862_p8, %p1861_p6 }
 0x3fc   : > { %p1859_p4 = pneg %p1858_p2 }
 0x3fd   : > { %p1865_p3 = por %p1864_p13, %p1863_p11 }
 0x3ff   : > { %p1866_p7 = pnand %p1865_p3, %p1859_p4 }
 0x401   : > { %1869 = shalt.err (!%p1866_p7)
}
 0x402   : > { %s1926_s23 = smov 128   ;;  %s1927_s15 = smov 8  }
 0x403   : > { %1654 = dma.vmem_to_hbm [thread:$0]  (%p2064_p12), %s2257_s25, 1024, %s2262_s27, %s1195_s13, %s1926_s23, %s1926_s23, %s1927_s15  }
 0x404 PF: > { %s2336_s16 = sld [smem:[#allocation14_spill]]  ;;  %p1676_p9 = scmp.ge.s32.totalorder %s1916_s12, 2 }
 0x405   : > { %s1241_s18 = sand.u32 1, %s1904_s30  }
 0x406   : > { %s1242_s26 = scalar_lea.sflag [#allocation4], %s1241_s18 }
 0x40a   : > { %p2337_p1 = scmp.ne.s32.totalorder %s2336_s16, 0 }
 0x40c   : > { %p1667_p0 = pnand %p1676_p9, %p2337_p1 }
 0x40e   : > { %1895 = dma.done.wait (!%p1667_p0), %s1242_s26, 1024  }
 0x40f   : > { %1897 = vsyncadd (!%p1667_p0), %s1242_s26, 4294966272  ;;  %s1251_s21 = scalar_lea.sflag [#allocation9], %s1241_s18 }
 0x410   : > { %1899 = dma.done.wait (!%p1667_p0), %s1251_s21, 128  }
 0x411   : > { %1901 = vsyncadd (!%p1667_p0), %s1251_s21, 4294967168  ;;  %s2338_s12 = sld [smem:[#allocation15_spill]]  ;;  %s2339_s30 = smov %s1908_s10 }
 0x412   : > { %s2340_s10 = smov %s1912_s11  ;;  %s2341_s11 = smov %s2060_s28 }
 0x417   : > { %p27_p12 = scmp.ge.s32.totalorder %s2338_s12, 5  }
 0x419   :  { %29 = sbr.rel (!%p27_p12) target bundleno = 8 (0x8), region = 142 }
 0x420   :  { %1256 = vsyncpa [#allocation3], 1 }
 0x421   :  { %1258 = vsyncpa [#allocation3 + $0x1], 1 }
 0x422   :  { %1259 = vsyncpa [#allocation6], 1 }
 0x423   :  { %1260 = vsyncpa [#allocation4], 1 }
 0x424   :  { %1262 = vsyncpa [#allocation4 + $0x1], 1 }
 0x425   :  { %1263 = vsyncpa [#allocation9], 1 }
 0x426   :  { %1265 = vsyncpa [#allocation9 + $0x1], 1 }

</bundles_post_ra>
